<compile_context>
chip_gen: v7x
topology: tpu7x:2x2x1
jax: 0.10.0
libtpu: 0.0.40
codegen_flags: <defaults>
</compile_context>

<pallas_src>
import math
import functools

import jax
import jax.numpy as jnp
from jax.experimental import pallas as pl
from jax.experimental.pallas import tpu as pltpu


# ----------------------------------------------------------------------------
# Pallas kernel: fused (x + PE) -> QKV proj -> softmax(dim=1) -> A @ V
# ----------------------------------------------------------------------------
def _mhsa_kernel(x_ref, pe_ref, w_ref, o_ref, *, c, scale):
    # x_ref : (1, C, N)  input feature map, channel-major (NCHW flattened)
    # pe_ref: (C, N)     positional encoding table (shared across batch)
    # w_ref : (3C, C)    fused [Wq^T; Wk^T; Wv^T], bf16
    # o_ref : (1, C, N)  output, channel-major
    xb = x_ref[0] + pe_ref[...]                              # (C, N) f32, VPU
    xb_bf = xb.astype(jnp.bfloat16)

    # Fused QKV projection on the MXU: (3C, C) @ (C, N) -> (3C, N), f32 acc.
    qkv = jnp.dot(w_ref[...], xb_bf, preferred_element_type=jnp.float32)
    q_t = qkv[:c] * scale                                    # (C, N), pre-scaled
    k_t = qkv[c:2 * c]                                       # (C, N)
    v_t = qkv[2 * c:3 * c]                                   # (C, N)

    # Transposed scores: st[j, i] = <q_i, k_j> / sqrt(C)   -> (N, N), lane-dense
    st = jnp.dot(k_t.T, q_t, preferred_element_type=jnp.float32)

    # PyTorch nn.Softmax(dim=1) on (B, N, N) == softmax over queries i,
    # which here is the LAST (lane) axis -> cheap lane reductions.
    m = jnp.max(st, axis=-1, keepdims=True)
    e = jnp.exp(st - m)
    denom = jnp.sum(e, axis=-1, keepdims=True)
    a_t = e * pl.reciprocal(denom, approx=True)              # a_t[j, i] = A[i, j]

    # out_t[d, i] = sum_j V[j, d] * A[i, j]  ==  (C, N) @ (N, N) -> (C, N)
    out_t = jnp.dot(v_t.astype(jnp.bfloat16), a_t.astype(jnp.bfloat16),
                    preferred_element_type=jnp.float32)
    o_ref[0] = out_t.astype(o_ref.dtype)


# ----------------------------------------------------------------------------
# Positional encoding (PositionalEncodingPermute2D), channel-major (C, H*W)
# ----------------------------------------------------------------------------
def positional_encoding_cn(C, H, W):
    ch = int(math.ceil(C / 2))  # module requires even `ch` (as does the PyTorch ref)
    inv_freq = 1.0 / (10000.0 ** (jnp.arange(0, ch, 2, dtype=jnp.float32) / ch))
    pos_x = jnp.arange(H, dtype=jnp.float32)   # torch's "w" axis (= H after permute)
    pos_y = jnp.arange(W, dtype=jnp.float32)
    sin_x = jnp.einsum("i,j->ij", pos_x, inv_freq)           # (H, ch/2)
    sin_y = jnp.einsum("i,j->ij", pos_y, inv_freq)           # (W, ch/2)
    emb_x = jnp.concatenate([jnp.sin(sin_x), jnp.cos(sin_x)], axis=-1)  # (H, ch)
    emb_y = jnp.concatenate([jnp.sin(sin_y), jnp.cos(sin_y)], axis=-1)  # (W, ch)
    emb = jnp.zeros((H, W, 2 * ch), jnp.float32)
    emb = emb.at[:, :, :ch].set(jnp.broadcast_to(emb_x[:, None, :], (H, W, ch)))
    emb = emb.at[:, :, ch:2 * ch].set(jnp.broadcast_to(emb_y[None, :, :], (H, W, ch)))
    pe_hwc = emb[:, :, :C]                                   # (H, W, C)
    return jnp.transpose(pe_hwc, (2, 0, 1)).reshape(C, H * W)


# ----------------------------------------------------------------------------
# Wrapper
# ----------------------------------------------------------------------------
def multi_head_self_attention(x, wq, wk, wv):
    """x: (B, C, H, W); wq/wk/wv: (C, C) used as rows @ W (PyTorch MultiHeadDense)."""
    B, C, H, W = x.shape
    N = H * W
    x_flat = x.reshape(B, C, N).astype(jnp.float32)          # free reshape, stays NCHW
    pe_t = positional_encoding_cn(C, H, W)                   # (C, N) f32
    # Fused, transposed QKV weight: q_t = Wq^T @ xb_t, etc.
    w_qkv_t = jnp.concatenate(
        [wq.T, wk.T, wv.T], axis=0).astype(jnp.bfloat16)     # (3C, C)
    scale = 1.0 / math.sqrt(C)

    out = pl.pallas_call(
        functools.partial(_mhsa_kernel, c=C, scale=scale),
        out_shape=jax.ShapeDtypeStruct((B, C, N), jnp.float32),
        grid=(B,),
        in_specs=[
            pl.BlockSpec((1, C, N), lambda b: (b, 0, 0)),    # x (per batch)
            pl.BlockSpec((C, N), lambda b: (0, 0)),          # PE (resident, shared)
            pl.BlockSpec((3 * C, C), lambda b: (0, 0)),      # fused QKV weight (resident)
        ],
        out_specs=pl.BlockSpec((1, C, N), lambda b: (b, 0, 0)),
        compiler_params=pltpu.CompilerParams(
            dimension_semantics=("parallel",),               # batch shards across TCs (v7x)
        ),
    )(x_flat, pe_t, w_qkv_t)
    return out.reshape(B, C, H, W)


# ----------------------------------------------------------------------------
# Pure-JAX reference (mirrors the PyTorch module exactly, f32)
# ----------------------------------------------------------------------------
def reference_mhsa(x, wq, wk, wv):
    B, C, H, W = x.shape
    N = H * W
    pe_t = positional_encoding_cn(C, H, W)
    xb = jnp.transpose(x.reshape(B, C, N) + pe_t[None], (0, 2, 1))   # (B, N, C)
    q = jnp.einsum("bnc,cd->bnd", xb, wq)
    k = jnp.einsum("bnc,cd->bnd", xb, wk)
    v = jnp.einsum("bnc,cd->bnd", xb, wv)
    s = jnp.einsum("bic,bjc->bij", q, k) / math.sqrt(C)
    a = jax.nn.softmax(s, axis=1)                                    # Softmax(dim=1)
    out = jnp.einsum("bij,bjd->bid", a, v)
    return jnp.transpose(out, (0, 2, 1)).reshape(B, C, H, W)


# ----------------------------------------------------------------------------
# Main
# ----------------------------------------------------------------------------
if __name__ == "__main__":
    key = jax.random.PRNGKey(0)
    kx, kq, kk, kv = jax.random.split(key, 4)

    B, C, H, W = 2, 8, 16, 16                                 # N = 256 (lane-dense)
    bound = 1.0 / math.sqrt(C)                                # kaiming_uniform(a=sqrt(5))
    x = jax.random.normal(kx, (B, C, H, W), dtype=jnp.float32)
    wq = jax.random.uniform(kq, (C, C), jnp.float32, -bound, bound)
    wk = jax.random.uniform(kk, (C, C), jnp.float32, -bound, bound)
    wv = jax.random.uniform(kv, (C, C), jnp.float32, -bound, bound)

    fwd = jax.jit(multi_head_self_attention)
    out = jax.block_until_ready(fwd(x, wq, wk, wv))

    assert out.shape == (B, C, H, W), out.shape
    assert bool(jnp.all(jnp.isfinite(out)))

    # Loose check vs f32 reference (kernel uses bf16 MXU feed + approx reciprocal).
    ref = reference_mhsa(x, wq, wk, wv)
    rel_err = jnp.mean(jnp.abs(out - ref)) / (jnp.mean(jnp.abs(ref)) + 1e-6)
    assert bool(rel_err < 5e-2), f"relative error too large: {rel_err}"

    print("KERNEL_OK")
</pallas_src>

<mosaic_0001>
module attributes {stable_mosaic.version = 11 : i64} {
  func.func @_mhsa_kernel(%arg0: i32, %arg1: memref<1x8x256xf32, #tpu.memory_space<vmem>>, %arg2: memref<8x256xf32, #tpu.memory_space<vmem>>, %arg3: memref<24x8xbf16, #tpu.memory_space<vmem>>, %arg4: memref<1x8x256xf32, #tpu.memory_space<vmem>>) attributes {dimension_semantics = [#tpu.dimension_semantics<parallel>], iteration_bounds = array<i64: 2>, scalar_prefetch = 0 : i64, scratch_operands = 0 : i64, tpu.core_type = #tpu.core_type<tc>, window_params = [{transform_indices = @transform_0, window_bounds = array<i64: 1, 8, 256>}, {pipeline_mode = #tpu.pipeline_mode<synchronous>, transform_indices = @transform_1, window_bounds = array<i64: 8, 256>}, {pipeline_mode = #tpu.pipeline_mode<synchronous>, transform_indices = @transform_2, window_bounds = array<i64: 24, 8>}, {transform_indices = @transform_3, window_bounds = array<i64: 1, 8, 256>}]} {
    %c0 = arith.constant 0 : index
    %c0_0 = arith.constant 0 : index
    %c0_1 = arith.constant 0 : index
    %0 = vector.load %arg1[%c0, %c0_0, %c0_1] : memref<1x8x256xf32, #tpu.memory_space<vmem>>, vector<1x8x256xf32>
    %1 = vector.shape_cast %0 : vector<1x8x256xf32> to vector<8x256xf32>
    %c0_2 = arith.constant 0 : index
    %c0_3 = arith.constant 0 : index
    %2 = vector.load %arg2[%c0_2, %c0_3] : memref<8x256xf32, #tpu.memory_space<vmem>>, vector<8x256xf32>
    %3 = arith.addf %1, %2 : vector<8x256xf32>
    %4 = arith.truncf %3 : vector<8x256xf32> to vector<8x256xbf16>
    %c0_4 = arith.constant 0 : index
    %c0_5 = arith.constant 0 : index
    %5 = vector.load %arg3[%c0_4, %c0_5] : memref<24x8xbf16, #tpu.memory_space<vmem>>, vector<24x8xbf16>
    %cst = arith.constant dense<0.000000e+00> : vector<24x256xf32>
    %6 = tpu.matmul %5, %4, %cst {dimension_numbers = #tpu.dot_dimension_numbers<[1], [0], [0], [1], [0, 0, 1, 1], [], []>} : vector<24x8xbf16>, vector<8x256xbf16>, vector<24x256xf32> -> vector<24x256xf32>
    %7 = vector.extract_strided_slice %6 {offsets = [0, 0], sizes = [8, 256], strides = [1, 1]} : vector<24x256xf32> to vector<8x256xf32>
    %cst_6 = arith.constant 0.353553385 : f32
    %8 = vector.broadcast %cst_6 : f32 to vector<8x256xf32>
    %9 = arith.mulf %7, %8 : vector<8x256xf32>
    %10 = vector.extract_strided_slice %6 {offsets = [8, 0], sizes = [8, 256], strides = [1, 1]} : vector<24x256xf32> to vector<8x256xf32>
    %11 = vector.extract_strided_slice %6 {offsets = [16, 0], sizes = [8, 256], strides = [1, 1]} : vector<24x256xf32> to vector<8x256xf32>
    %12 = tpu.transpose %10, [1, 0] : vector<8x256xf32> -> vector<256x8xf32>
    %cst_7 = arith.constant dense<0.000000e+00> : vector<256x256xf32>
    %13 = tpu.matmul %12, %9, %cst_7 {dimension_numbers = #tpu.dot_dimension_numbers<[1], [0], [0], [1], [0, 0, 1, 1], [], []>} : vector<256x8xf32>, vector<8x256xf32>, vector<256x256xf32> -> vector<256x256xf32>
    %cst_8 = arith.constant dense<0xFF800000> : vector<256xf32>
    %14 = vector.multi_reduction <maximumf>, %13, %cst_8 [1] : vector<256x256xf32> to vector<256xf32>
    %15 = vector.shape_cast %14 : vector<256xf32> to vector<256x1xf32>
    %16 = vector.broadcast %15 : vector<256x1xf32> to vector<256x256xf32>
    %17 = arith.subf %13, %16 : vector<256x256xf32>
    %18 = math.exp %17 : vector<256x256xf32>
    %cst_9 = arith.constant dense<0.000000e+00> : vector<256xf32>
    %19 = vector.multi_reduction <add>, %18, %cst_9 [1] : vector<256x256xf32> to vector<256xf32>
    %20 = vector.shape_cast %19 : vector<256xf32> to vector<256x1xf32>
    %21 = tpu.reciprocal %20 {approx = true} : vector<256x1xf32> -> vector<256x1xf32>
    %22 = vector.broadcast %21 : vector<256x1xf32> to vector<256x256xf32>
    %23 = arith.mulf %18, %22 : vector<256x256xf32>
    %24 = arith.truncf %11 : vector<8x256xf32> to vector<8x256xbf16>
    %25 = arith.truncf %23 : vector<256x256xf32> to vector<256x256xbf16>
    %cst_10 = arith.constant dense<0.000000e+00> : vector<8x256xf32>
    %26 = tpu.matmul %24, %25, %cst_10 {dimension_numbers = #tpu.dot_dimension_numbers<[1], [0], [0], [1], [0, 0, 1, 1], [], []>} : vector<8x256xbf16>, vector<256x256xbf16>, vector<8x256xf32> -> vector<8x256xf32>
    %c0_11 = arith.constant 0 : index
    %c0_12 = arith.constant 0 : index
    %c0_13 = arith.constant 0 : index
    %27 = vector.load %arg4[%c0_11, %c0_12, %c0_13] : memref<1x8x256xf32, #tpu.memory_space<vmem>>, vector<1x8x256xf32>
    %28 = vector.shape_cast %27 : vector<1x8x256xf32> to vector<8x256xf32>
    %29 = vector.shape_cast %26 : vector<8x256xf32> to vector<1x8x256xf32>
    tpu.vector_store %arg4[%c0_11, %c0_12, %c0_13], %29 {strides = array<i32>} : memref<1x8x256xf32, #tpu.memory_space<vmem>>, vector<1x8x256xf32>,
    return
  }
  func.func @transform_0(%arg0: i32) -> (i32, i32, i32) {
    %c0_i32 = arith.constant 0 : i32
    %c0_i32_0 = arith.constant 0 : i32
    %c0_i32_1 = arith.constant 0 : i32
    return %arg0, %c0_i32, %c0_i32_0 : i32, i32, i32
  }
  func.func @transform_1(%arg0: i32) -> (i32, i32) {
    %c0_i32 = arith.constant 0 : i32
    %c0_i32_0 = arith.constant 0 : i32
    %c0_i32_1 = arith.constant 0 : i32
    return %c0_i32, %c0_i32_0 : i32, i32
  }
  func.func @transform_2(%arg0: i32) -> (i32, i32) {
    %c0_i32 = arith.constant 0 : i32
    %c0_i32_0 = arith.constant 0 : i32
    %c0_i32_1 = arith.constant 0 : i32
    return %c0_i32, %c0_i32_0 : i32, i32
  }
  func.func @transform_3(%arg0: i32) -> (i32, i32, i32) {
    %c0_i32 = arith.constant 0 : i32
    %c0_i32_0 = arith.constant 0 : i32
    %c0_i32_1 = arith.constant 0 : i32
    return %arg0, %c0_i32, %c0_i32_0 : i32, i32, i32
  }
}

</mosaic_0001>

<bundles_post_ra>
// kernel: multi_head_self_attention.1
= control target key start
LH: loop header
LB: loop body
LE: loop exit
PB: predicated region body
PF: predicated region fallthrough
CT: control target
= control target key end

     0   :  { %s1571_s12 = smov 0   ;;  %s2189_s0 = inlined_call_operand.vmem [shape: f32[2,8,256], index: 0, kind: input, shape index: {}]   ;;  %s2190_s1 = inlined_call_operand.vmem [shape: f32[8,256], index: 1, kind: input, shape index: {}]   ;;  %s2191_s2 = inlined_call_operand.vmem [shape: bf16[24,8], index: 2, kind: input, shape index: {}]   ;;  %s2192_s3 = inlined_call_operand.vmem [shape: f32[2,8,256], index: 3, kind: output, shape index: {}]  }
   0x1 LB: > { %s1287_s13 = sadd.s32 4294967295, %s1547_s12   ;;  %p1291_p0 = scmp.ge.s32.totalorder %s1547_s12, 1  ;;  %s1547_s12 = sphi %s1571_s12, %s13_s12  }
   0x2   : > { %p137_p1 = scmp.lt.s32.totalorder %s1547_s12, 3 }
   0x4   : > { %p138_p2 = pnand %p1291_p0, %p137_p1 }
   0x6   : > { %141 = sbr.rel (%p138_p2) target bundleno = 1245 (0x4dd), region = 32 }
   0xd   : > { %p161_p3 = scmp.lt.s32.totalorder %s1287_s13, 1  ;;  %v1549_v0 = vmov 0   ;;  %v175_v1 = vld [vmem:[%s2190_s1 + $0x8] sm:$0xff]  ;;  %v174_v2 = vld [vmem:[%s2190_s1] sm:$0xff]  ;;  %vm198_vm0 = vcmask 1043456   ;;  %vm191_vm1 = vcmask 64512  }
   0xe   : > { %237 = vmatprep.mubr.bf16.mxu0 %v1549_v0  ;;  %v1347_v10 = vld [vmem:[%s2191_s2] sm:$0xff]   ;;  %v1550_v11 = vmov 0.0  }
   0xf   : > { %s2280_s13 = smov (!%p161_p3, %s1287_s13), 1  ;;  %482 = vmatprep.mubr.f32.mxu1 %v1550_v11 }
  0x10   : > { %s1335_s14 = sshll.u32 %s2280_s13, 4 }
  0x11   : > { %s165_s21 = scalar_lea.vmem %s2189_s0, %s1335_s14  ;;  %s170_s28 = scalar_lea.vmem %s2192_s3, %s1335_s14 }
  0x12   : > { %v173_v3 = vld [vmem:[%s165_s21 + $0x8] sm:$0xff]  ;;  %v172_v4 = vld [vmem:[%s165_s21] sm:$0xff] }
  0x13   : > { %v177_v5 = vadd.f32 %v175_v1, %v173_v3  ;;  %v176_v6 = vadd.f32 %v174_v2, %v172_v4 }
  0x15   : > { %v179_v7 = vpack.c.bf16 %v177_v5, %v177_v5  ;;  %v178_v8 = vpack.c.bf16 %v176_v6, %v176_v6 }
  0x17   : > { %1298 = vmatprep.subr.msk.bf16.mxu0 %vm198_vm0, %v179_v7  ;;  %v200_v9 = vsel %vm198_vm0, %v178_v8, 0 }
  0x18   : > { %206 = vmatpush1.bf16.msra.mxu0 %v200_v9 }
  0x1b   : > { %1299 = vmatmul.mubr.msk.bf16.vlgmr.msra.gmra.mrb[0].mxu0 %vm191_vm1, %v1347_v10 }
  0x1c   : > { %247 = vmatprep.mubr.bf16.mxu0 %v1549_v0 }
  0xee   : > { %v239_v12 = vpop.f32.mrb[0].mxu0 }
  0xef   : > { %v241_v13 = vpop.f32.mrb[1].mxu0  ;;  %v256_v16 = vmul.f32 0.35355338, %v239_v12 }
  0xf0   : > { %v243_v14 = vpop.f32.mrb[2].mxu0  ;;  %v257_v15 = vmul.f32 0.35355338, %v241_v13 }
  0xf1   : > { %258 = vxpose.xlu0.b32.start.end [1/1] (short) %v243_v14, 128  ;;  %v245_v17 = vpop.f32.mrb[3].mxu0 }
  0xf2   : > { %418 = vmatprep.subr.mxu1 %v257_v15 }
  0xf3   : > { %419 = vmatpush1.msra.mxu1 %v256_v16 }
 0x12e   : > { %290 = vxpose.xlu0.b32.start.end [1/1] (short) %v245_v17, 128 }
 0x171   : > { %v274_v18 = vpop.trf.xlu0 }
 0x172   : > { %1301 = vmatmul.mubr.msk.f32.vlgmr.msra.gmra.mrb[0].mxu1 %vm191_vm1, %v274_v18 }
 0x173   : > { %488 = vmatprep.mubr.f32.mxu1 %v1550_v11 }
 0x175   : > { %v275_v19 = vpop.trf.xlu0 }
 0x176   : > { %1302 = vmatmul.mubr.msk.f32.gmra.mrb[2].mxu1 %vm191_vm1, %v275_v19 }
 0x177   : > { %494 = vmatprep.mubr.f32.mxu1 %v1550_v11 }
 0x179   : > { %v276_v20 = vpop.trf.xlu0 }
 0x17a   : > { %1303 = vmatmul.mubr.msk.f32.gmra.mrb[4].mxu1 %vm191_vm1, %v276_v20 }
 0x17b   : > { %500 = vmatprep.mubr.f32.mxu1 %v1550_v11 }
 0x17d   : > { %v277_v21 = vpop.trf.xlu0 }
 0x17e   : > { %1304 = vmatmul.mubr.msk.f32.gmra.mrb[6].mxu1 %vm191_vm1, %v277_v21 }
 0x17f   : > { %506 = vmatprep.mubr.f32.mxu1 %v1550_v11 }
 0x181   : > { %v278_v22 = vpop.trf.xlu0 }
 0x182   : > { %1305 = vmatmul.mubr.msk.f32.gmra.mrb[8].mxu1 %vm191_vm1, %v278_v22 }
 0x183   : > { %512 = vmatprep.mubr.f32.mxu1 %v1550_v11 }
 0x185   : > { %v279_v23 = vpop.trf.xlu0 }
 0x186   : > { %1306 = vmatmul.mubr.msk.f32.gmra.mrb[10].mxu1 %vm191_vm1, %v279_v23 }
 0x187   : > { %518 = vmatprep.mubr.f32.mxu1 %v1550_v11 }
 0x189   : > { %v280_v24 = vpop.trf.xlu0 }
 0x18a   : > { %1307 = vmatmul.mubr.msk.f32.gmra.mrb[12].mxu1 %vm191_vm1, %v280_v24 }
 0x18b   : > { %524 = vmatprep.mubr.f32.mxu1 %v1550_v11 }
 0x18d   : > { %v281_v25 = vpop.trf.xlu0 }
 0x18e   : > { %1308 = vmatmul.mubr.msk.f32.gmra.mrb[14].mxu1 %vm191_vm1, %v281_v25 }
 0x18f   : > { %530 = vmatprep.mubr.f32.mxu1 %v1550_v11 }
 0x191   : > { %v282_v26 = vpop.trf.xlu0 }
 0x192   : > { %1309 = vmatmul.mubr.msk.f32.gmra.mrb[16].mxu1 %vm191_vm1, %v282_v26 }
 0x193   : > { %536 = vmatprep.mubr.f32.mxu1 %v1550_v11 }
 0x195   : > { %v283_v27 = vpop.trf.xlu0 }
 0x196   : > { %1310 = vmatmul.mubr.msk.f32.gmra.mrb[18].mxu1 %vm191_vm1, %v283_v27 }
 0x197   : > { %542 = vmatprep.mubr.f32.mxu1 %v1550_v11 }
 0x199   : > { %v284_v28 = vpop.trf.xlu0 }
 0x19a   : > { %1311 = vmatmul.mubr.msk.f32.gmra.mrb[20].mxu1 %vm191_vm1, %v284_v28 }
 0x19b   : > { %548 = vmatprep.mubr.f32.mxu1 %v1550_v11 }
 0x19d   : > { %v285_v29 = vpop.trf.xlu0 }
 0x19e   : > { %1312 = vmatmul.mubr.msk.f32.gmra.mrb[22].mxu1 %vm191_vm1, %v285_v29 }
 0x19f   : > { %554 = vmatprep.mubr.f32.mxu1 %v1550_v11 }
 0x1a1   : > { %v286_v30 = vpop.trf.xlu0 }
 0x1a2   : > { %1313 = vmatmul.mubr.msk.f32.gmra.mrb[24].mxu1 %vm191_vm1, %v286_v30 }
 0x1a3   : > { %560 = vmatprep.mubr.f32.mxu1 %v1550_v11 }
 0x1a5   : > { %v287_v31 = vpop.trf.xlu0 }
 0x1a6   : > { %1314 = vmatmul.mubr.msk.f32.gmra.mrb[26].mxu1 %vm191_vm1, %v287_v31 }
 0x1a7   : > { %566 = vmatprep.mubr.f32.mxu1 %v1550_v11 }
 0x1a9   : > { %v288_v32 = vpop.trf.xlu0 }
 0x1aa   : > { %1315 = vmatmul.mubr.msk.f32.gmra.mrb[28].mxu1 %vm191_vm1, %v288_v32 }
 0x1ab   : > { %572 = vmatprep.mubr.f32.mxu1 %v1550_v11 }
 0x1ad   : > { %v289_v33 = vpop.trf.xlu0 }
 0x1ae   : > { %1316 = vmatmul.mubr.msk.f32.gmra.mrb[30].mxu1 %vm191_vm1, %v289_v33 }
 0x1af   : > { %578 = vmatprep.mubr.f32.mxu1 %v1550_v11 }
 0x1b1   : > { %v306_v34 = vpop.trf.xlu0 }
 0x1b2   : > { %1317 = vmatmul.mubr.msk.f32.gmra.mrb[32].mxu1 %vm191_vm1, %v306_v34 }
 0x1b3   : > { %584 = vmatprep.mubr.f32.mxu1 %v1550_v11 }
 0x1b5   : > { %v307_v35 = vpop.trf.xlu0 }
 0x1b6   : > { %1318 = vmatmul.mubr.msk.f32.gmra.mrb[34].mxu1 %vm191_vm1, %v307_v35 }
 0x1b7   : > { %590 = vmatprep.mubr.f32.mxu1 %v1550_v11 }
 0x1b9   : > { %v308_v36 = vpop.trf.xlu0 }
 0x1ba   : > { %1319 = vmatmul.mubr.msk.f32.gmra.mrb[36].mxu1 %vm191_vm1, %v308_v36 }
 0x1bb   : > { %596 = vmatprep.mubr.f32.mxu1 %v1550_v11 }
 0x1bd   : > { %v309_v37 = vpop.trf.xlu0 }
 0x1be   : > { %1320 = vmatmul.mubr.msk.f32.gmra.mrb[38].mxu1 %vm191_vm1, %v309_v37 }
 0x1bf   : > { %602 = vmatprep.mubr.f32.mxu1 %v1550_v11 }
 0x1c1   : > { %v310_v38 = vpop.trf.xlu0 }
 0x1c2   : > { %1321 = vmatmul.mubr.msk.f32.gmra.mrb[40].mxu1 %vm191_vm1, %v310_v38 }
 0x1c3   : > { %608 = vmatprep.mubr.f32.mxu1 %v1550_v11 }
 0x1c5   : > { %v311_v39 = vpop.trf.xlu0 }
 0x1c6   : > { %1322 = vmatmul.mubr.msk.f32.gmra.mrb[42].mxu1 %vm191_vm1, %v311_v39 }
 0x1c7   : > { %614 = vmatprep.mubr.f32.mxu1 %v1550_v11 }
 0x1c9   : > { %v312_v40 = vpop.trf.xlu0 }
 0x1ca   : > { %1323 = vmatmul.mubr.msk.f32.gmra.mrb[44].mxu1 %vm191_vm1, %v312_v40 }
 0x1cb   : > { %620 = vmatprep.mubr.f32.mxu1 %v1550_v11 }
 0x1cd   : > { %v313_v41 = vpop.trf.xlu0 }
 0x1ce   : > { %1324 = vmatmul.mubr.msk.f32.gmra.mrb[46].mxu1 %vm191_vm1, %v313_v41 }
 0x1cf   : > { %626 = vmatprep.mubr.f32.mxu1 %v1550_v11 }
 0x1d1   : > { %v314_v42 = vpop.trf.xlu0 }
 0x1d2   : > { %1325 = vmatmul.mubr.msk.f32.gmra.mrb[48].mxu1 %vm191_vm1, %v314_v42 }
 0x1d3   : > { %632 = vmatprep.mubr.f32.mxu1 %v1550_v11 }
 0x1d5   : > { %v315_v43 = vpop.trf.xlu0 }
 0x1d6   : > { %1326 = vmatmul.mubr.msk.f32.gmra.mrb[50].mxu1 %vm191_vm1, %v315_v43 }
 0x1d7   : > { %638 = vmatprep.mubr.f32.mxu1 %v1550_v11 }
 0x1d9   : > { %v316_v44 = vpop.trf.xlu0 }
 0x1da   : > { %1327 = vmatmul.mubr.msk.f32.gmra.mrb[52].mxu1 %vm191_vm1, %v316_v44 }
 0x1db   : > { %644 = vmatprep.mubr.f32.mxu1 %v1550_v11 }
 0x1dd   : > { %v317_v45 = vpop.trf.xlu0 }
 0x1de   : > { %1328 = vmatmul.mubr.msk.f32.gmra.mrb[54].mxu1 %vm191_vm1, %v317_v45 }
 0x1df   : > { %650 = vmatprep.mubr.f32.mxu1 %v1550_v11 }
 0x1e1   : > { %v318_v46 = vpop.trf.xlu0 }
 0x1e2   : > { %1329 = vmatmul.mubr.msk.f32.gmra.mrb[56].mxu1 %vm191_vm1, %v318_v46 }
 0x1e3   : > { %656 = vmatprep.mubr.f32.mxu1 %v1550_v11 }
 0x1e5   : > { %v319_v47 = vpop.trf.xlu0 }
 0x1e6   : > { %1330 = vmatmul.mubr.msk.f32.gmra.mrb[58].mxu1 %vm191_vm1, %v319_v47 }
 0x1e7   : > { %662 = vmatprep.mubr.f32.mxu1 %v1550_v11 }
 0x1e9   : > { %v320_v48 = vpop.trf.xlu0 }
 0x1ea   : > { %1331 = vmatmul.mubr.msk.f32.gmra.mrb[60].mxu1 %vm191_vm1, %v320_v48 }
 0x1eb   : > { %668 = vmatprep.mubr.f32.mxu1 %v1550_v11 }
 0x1ed   : > { %v321_v49 = vpop.trf.xlu0 }
 0x1ee   : > { %1332 = vmatmul.mubr.msk.f32.gmra.mrb[62].mxu1 %vm191_vm1, %v321_v49 }
 0x245   : > { %v1661_v50 = vpop.f32.mrb[0].mxu1 }
 0x246   : > { %v1663_v51 = vpop.f32.mrb[1].mxu1 }
 0x247   : > { %v675_v52 = vmax.f32 %v1661_v50, %v1663_v51 }
 0x249   : > { %676 = vmax.xlane.f32.xlu1 %v675_v52  ;;  %v1667_v53 = vpop.f32.mrb[2].mxu1 }
 0x24a   : > { %v1669_v54 = vpop.f32.mrb[3].mxu1 }
 0x24b   : > { %v678_v55 = vmax.f32 %v1667_v53, %v1669_v54 }
 0x24d   : > { %679 = vmax.xlane.f32.xlu1 %v678_v55  ;;  %v1673_v56 = vpop.f32.mrb[4].mxu1 }
 0x24e   : > { %v1675_v57 = vpop.f32.mrb[5].mxu1 }
 0x24f   : > { %v681_v58 = vmax.f32 %v1673_v56, %v1675_v57 }
 0x251   : > { %682 = vmax.xlane.f32.xlu1 %v681_v58  ;;  %v1679_v59 = vpop.f32.mrb[6].mxu1 }
 0x252   : > { %v1681_v60 = vpop.f32.mrb[7].mxu1 }
 0x253   : > { %v684_v61 = vmax.f32 %v1679_v59, %v1681_v60 }
 0x255   : > { %685 = vmax.xlane.f32.xlu1 %v684_v61  ;;  %v1685_v62 = vpop.f32.mrb[8].mxu1 }
 0x256   : > { %v1687_v63 = vpop.f32.mrb[9].mxu1 }
 0x257   : > { %v687_v0 = vmax.f32 %v1685_v62, %v1687_v63 }
 0x259   : > { %688 = vmax.xlane.f32.xlu1 %v687_v0  ;;  %v1691_v1 = vpop.f32.mrb[10].mxu1 }
 0x25a   : > { %v1693_v2 = vpop.f32.mrb[11].mxu1 }
 0x25b   : > { %v690_v3 = vmax.f32 %v1691_v1, %v1693_v2 }
 0x25d   : > { %691 = vmax.xlane.f32.xlu1 %v690_v3  ;;  %v1697_v4 = vpop.f32.mrb[12].mxu1 }
 0x25e   : > { %v1699_v5 = vpop.f32.mrb[13].mxu1 }
 0x25f   : > { %v693_v6 = vmax.f32 %v1697_v4, %v1699_v5 }
 0x261   : > { %694 = vmax.xlane.f32.xlu1 %v693_v6  ;;  %v1703_v7 = vpop.f32.mrb[14].mxu1 }
 0x262   : > { %v1705_v8 = vpop.f32.mrb[15].mxu1 }
 0x263   : > { %v696_v9 = vmax.f32 %v1703_v7, %v1705_v8 }
 0x265   : > { %697 = vmax.xlane.f32.xlu1 %v696_v9  ;;  %v1709_v10 = vpop.f32.mrb[16].mxu1 }
 0x266   : > { %v1711_v11 = vpop.f32.mrb[17].mxu1 }
 0x267   : > { %v699_v12 = vmax.f32 %v1709_v10, %v1711_v11 }
 0x269   : > { %700 = vmax.xlane.f32.xlu1 %v699_v12  ;;  %v1715_v13 = vpop.f32.mrb[18].mxu1 }
 0x26a   : > { %v1717_v14 = vpop.f32.mrb[19].mxu1 }
 0x26b   : > { %v702_v15 = vmax.f32 %v1715_v13, %v1717_v14 }
 0x26d   : > { %703 = vmax.xlane.f32.xlu1 %v702_v15  ;;  %v1721_v16 = vpop.f32.mrb[20].mxu1 }
 0x26e   : > { %v1723_v17 = vpop.f32.mrb[21].mxu1 }
 0x26f   : > { %v705_v18 = vmax.f32 %v1721_v16, %v1723_v17 }
 0x271   : > { %706 = vmax.xlane.f32.xlu1 %v705_v18  ;;  %v1727_v19 = vpop.f32.mrb[22].mxu1 }
 0x272   : > { %v1729_v20 = vpop.f32.mrb[23].mxu1 }
 0x273   : > { %v708_v21 = vmax.f32 %v1727_v19, %v1729_v20 }
 0x275   : > { %709 = vmax.xlane.f32.xlu1 %v708_v21  ;;  %v1733_v22 = vpop.f32.mrb[24].mxu1 }
 0x276   : > { %v1735_v23 = vpop.f32.mrb[25].mxu1 }
 0x277   : > { %v711_v24 = vmax.f32 %v1733_v22, %v1735_v23 }
 0x279   : > { %712 = vmax.xlane.f32.xlu1 %v711_v24  ;;  %v1739_v25 = vpop.f32.mrb[26].mxu1  ;;  %v1348_v24 = vld [vmem:[%s2191_s2 + $0x8] ss:$0 sps:$4 sm:$0xff]  }
 0x27a   : > { %v1741_v26 = vpop.f32.mrb[27].mxu1  ;;  %1300 = vmatmul.mubr.msk.bf16.gmra.mrb[4].mxu0 %vm191_vm1, %v1348_v24 }
 0x27b   : > { %v714_v27 = vmax.f32 %v1739_v25, %v1741_v26 }
 0x27d   : > { %715 = vmax.xlane.f32.xlu1 %v714_v27  ;;  %v1745_v28 = vpop.f32.mrb[28].mxu1 }
 0x27e   : > { %v1747_v29 = vpop.f32.mrb[29].mxu1 }
 0x27f   : > { %v717_v30 = vmax.f32 %v1745_v28, %v1747_v29 }
 0x281   : > { %718 = vmax.xlane.f32.xlu1 %v717_v30  ;;  %v1751_v31 = vpop.f32.mrb[30].mxu1 }
 0x282   : > { %v1753_v32 = vpop.f32.mrb[31].mxu1 }
 0x283   : > { %v720_v33 = vmax.f32 %v1751_v31, %v1753_v32 }
 0x285   : > { %721 = vmax.xlane.f32.xlu1 %v720_v33  ;;  %v1757_v34 = vpop.f32.mrb[32].mxu1 }
 0x286   : > { %v1759_v35 = vpop.f32.mrb[33].mxu1 }
 0x287   : > { %v723_v36 = vmax.f32 %v1757_v34, %v1759_v35 }
 0x289   : > { %724 = vmax.xlane.f32.xlu1 %v723_v36  ;;  %v1763_v37 = vpop.f32.mrb[34].mxu1 }
 0x28a   : > { %v1765_v38 = vpop.f32.mrb[35].mxu1 }
 0x28b   : > { %v726_v39 = vmax.f32 %v1763_v37, %v1765_v38 }
 0x28d   : > { %727 = vmax.xlane.f32.xlu0 %v726_v39  ;;  %v1769_v40 = vpop.f32.mrb[36].mxu1 }
 0x28e   : > { %v1771_v41 = vpop.f32.mrb[37].mxu1 }
 0x28f   : > { %v729_v42 = vmax.f32 %v1769_v40, %v1771_v41 }
 0x291   : > { %730 = vmax.xlane.f32.xlu1 %v729_v42  ;;  %v1775_v43 = vpop.f32.mrb[38].mxu1 }
 0x292   : > { %v1777_v44 = vpop.f32.mrb[39].mxu1 }
 0x293   : > { %v732_v45 = vmax.f32 %v1775_v43, %v1777_v44 }
 0x295   : > { %733 = vmax.xlane.f32.xlu1 %v732_v45  ;;  %v1781_v46 = vpop.f32.mrb[40].mxu1 }
 0x296   : > { %v1783_v47 = vpop.f32.mrb[41].mxu1 }
 0x297   : > { %v735_v48 = vmax.f32 %v1781_v46, %v1783_v47 }
 0x299   : > { %736 = vmax.xlane.f32.xlu1 %v735_v48  ;;  %v1787_v49 = vpop.f32.mrb[42].mxu1 }
 0x29a   : > { %v1789_v52 = vpop.f32.mrb[43].mxu1 }
 0x29b   : > { %v738_v55 = vmax.f32 %v1787_v49, %v1789_v52 }
 0x29d   : > { %739 = vmax.xlane.f32.xlu1 %v738_v55  ;;  %v1793_v58 = vpop.f32.mrb[44].mxu1 }
 0x29e   : > { %v1795_v61 = vpop.f32.mrb[45].mxu1 }
 0x29f   : > { %v741_v0 = vmax.f32 %v1793_v58, %v1795_v61 }
 0x2a1   : > { %742 = vmax.xlane.f32.xlu1 %v741_v0  ;;  %v1799_v3 = vpop.f32.mrb[46].mxu1 }
 0x2a2   : > { %v1801_v6 = vpop.f32.mrb[47].mxu1 }
 0x2a3   : > { %v744_v9 = vmax.f32 %v1799_v3, %v1801_v6 }
 0x2a5   : > { %745 = vmax.xlane.f32.xlu1 %v744_v9  ;;  %v1805_v12 = vpop.f32.mrb[48].mxu1 }
 0x2a6   : > { %v1807_v15 = vpop.f32.mrb[49].mxu1 }
 0x2a7   : > { %v747_v18 = vmax.f32 %v1805_v12, %v1807_v15 }
 0x2a9   : > { %748 = vmax.xlane.f32.xlu1 %v747_v18  ;;  %v1811_v21 = vpop.f32.mrb[50].mxu1 }
 0x2aa   : > { %2221 = vst [vmem:[#allocation2_spill] sm:$0xff] %v1811_v21  ;;  %v1816_v27 = vpop.f32.mrb[51].mxu1 }
 0x2ab   : > { %2222 = vst [vmem:[#allocation3_spill] sm:$0xff] %v1816_v27  ;;  %v750_v30 = vmax.f32 %v1811_v21, %v1816_v27 }
 0x2ad   : > { %751 = vmax.xlane.f32.xlu1 %v750_v30  ;;  %v1821_v33 = vpop.f32.mrb[52].mxu1 }
 0x2ae   : > { %2223 = vst [vmem:[#allocation4_spill] sm:$0xff] %v1821_v33  ;;  %v1823_v36 = vpop.f32.mrb[53].mxu1 }
 0x2af   : > { %2224 = vst [vmem:[#allocation5_spill] sm:$0xff] %v1823_v36  ;;  %v753_v39 = vmax.f32 %v1821_v33, %v1823_v36 }
 0x2b1   : > { %754 = vmax.xlane.f32.xlu1 %v753_v39  ;;  %v1827_v42 = vpop.f32.mrb[54].mxu1 }
 0x2b2   : > { %2225 = vst [vmem:[#allocation6_spill] sm:$0xff] %v1827_v42  ;;  %v1829_v45 = vpop.f32.mrb[55].mxu1 }
 0x2b3   : > { %2226 = vst [vmem:[#allocation7_spill] sm:$0xff] %v1829_v45  ;;  %v756_v48 = vmax.f32 %v1827_v42, %v1829_v45 }
 0x2b5   : > { %757 = vmax.xlane.f32.xlu1 %v756_v48  ;;  %v1833_v55 = vpop.f32.mrb[56].mxu1 }
 0x2b6   : > { %2227 = vst [vmem:[#allocation8_spill] sm:$0xff] %v1833_v55  ;;  %v1835_v0 = vpop.f32.mrb[57].mxu1 }
 0x2b7   : > { %2228 = vst [vmem:[#allocation9_spill] sm:$0xff] %v1835_v0  ;;  %v759_v9 = vmax.f32 %v1833_v55, %v1835_v0 }
 0x2b9   : > { %760 = vmax.xlane.f32.xlu1 %v759_v9  ;;  %v1839_v18 = vpop.f32.mrb[58].mxu1 }
 0x2ba   : > { %2229 = vst [vmem:[#allocation10_spill] sm:$0xff] %v1839_v18  ;;  %v1841_v24 = vpop.f32.mrb[59].mxu1 }
 0x2bb   : > { %2230 = vst [vmem:[#allocation11_spill] sm:$0xff] %v1841_v24  ;;  %v762_v30 = vmax.f32 %v1839_v18, %v1841_v24 }
 0x2bd   : > { %763 = vmax.xlane.f32.xlu1 %v762_v30  ;;  %v1845_v39 = vpop.f32.mrb[60].mxu1 }
 0x2be   : > { %2231 = vst [vmem:[#allocation12_spill] sm:$0xff] %v1845_v39  ;;  %v1847_v45 = vpop.f32.mrb[61].mxu1 }
 0x2bf   : > { %2232 = vst [vmem:[#allocation13_spill] sm:$0xff] %v1847_v45  ;;  %v765_v48 = vmax.f32 %v1845_v39, %v1847_v45 }
 0x2c1   : > { %766 = vmax.xlane.f32.xlu1 %v765_v48  ;;  %v1851_v42 = vpop.f32.mrb[62].mxu1 }
 0x2c2   : > { %v1853_v0 = vpop.f32.mrb[63].mxu1 }
 0x2c3   : > { %2233 = vst [vmem:[#allocation14_spill] sm:$0xff] %v1853_v0  ;;  %v768_v9 = vmax.f32 %v1851_v42, %v1853_v0 }
 0x2c5   : > { %769 = vmax.xlane.f32.xlu1 %v768_v9 }
 0x2d6   : > { %v677_v55 = vpop.xlane.xlu1 %676 }
 0x2d7   : > { %v771_v24 = vsub.f32 %v1661_v50, %v677_v55  ;;  %v772_v30 = vsub.f32 %v1663_v51, %v677_v55 }
 0x2d9   : > { %v835_v18 = vmul.f32 1.442695, %v771_v24  ;;  %v837_v36 = vmul.f32 1.442695, %v772_v30 }
 0x2da   : > { %v680_v33 = vpop.xlane.xlu1 %679 }
 0x2db   : > { %1349 = vpow2.f32 %v835_v18  ;;  %v773_v45 = vsub.f32 %v1667_v53, %v680_v33  ;;  %v774_v48 = vsub.f32 %v1669_v54, %v680_v33 }
 0x2dc   : > { %1351 = vpow2.f32 %v837_v36 }
 0x2dd   : > { %v839_v39 = vmul.f32 1.442695, %v773_v45  ;;  %v841_v27 = vmul.f32 1.442695, %v774_v48 }
 0x2de   : > { %v683_v21 = vpop.xlane.xlu1 %682 }
 0x2df   : > { %1353 = vpow2.f32 %v839_v39  ;;  %v775_v9 = vsub.f32 %v1673_v56, %v683_v21  ;;  %v776_v0 = vsub.f32 %v1675_v57, %v683_v21 }
 0x2e0   : > { %1355 = vpow2.f32 %v841_v27 }
 0x2e1   : > { %v843_v50 = vmul.f32 1.442695, %v775_v9  ;;  %v845_v51 = vmul.f32 1.442695, %v776_v0 }
 0x2e2   : > { %v686_v55 = vpop.xlane.xlu1 %685 }
 0x2e3   : > { %1357 = vpow2.f32 %v843_v50  ;;  %v777_v18 = vsub.f32 %v1679_v59, %v686_v55  ;;  %v778_v53 = vsub.f32 %v1681_v60, %v686_v55 }
 0x2e4   : > { %1359 = vpow2.f32 %v845_v51 }
 0x2e5   : > { %v1865_v54 = vpop.eup %1349  ;;  %v847_v33 = vmul.f32 1.442695, %v777_v18  ;;  %v849_v36 = vmul.f32 1.442695, %v778_v53 }
 0x2e6   : > { %v1867_v45 = vpop.eup %1351  ;;  %v689_v24 = vpop.xlane.xlu1 %688 }
 0x2e7   : > { %1361 = vpow2.f32 %v847_v33  ;;  %v779_v56 = vsub.f32 %v1685_v62, %v689_v24  ;;  %v780_v57 = vsub.f32 %v1687_v63, %v689_v24  ;;  %v963_v21 = vadd.f32 %v1867_v45, %v1865_v54 }
 0x2e8   : > { %1363 = vpow2.f32 %v849_v36 }
 0x2e9   : > { %v1873_v59 = vpop.eup %1353  ;;  %v851_v60 = vmul.f32 1.442695, %v779_v56  ;;  %v853_v27 = vmul.f32 1.442695, %v780_v57  ;;  %964 = vadd.xlane.f32.xlu1 %v963_v21 }
 0x2ea   : > { %v1875_v0 = vpop.eup %1355  ;;  %v692_v39 = vpop.xlane.xlu1 %691 }
 0x2eb   : > { %1365 = vpow2.f32 %v851_v60  ;;  %v781_v30 = vsub.f32 %v1691_v1, %v692_v39  ;;  %v782_v48 = vsub.f32 %v1693_v2, %v692_v39  ;;  %v966_v62 = vadd.f32 %v1875_v0, %v1873_v59 }
 0x2ec   : > { %1367 = vpow2.f32 %v853_v27 }
 0x2ed   : > { %v1881_v63 = vpop.eup %1357  ;;  %v855_v9 = vmul.f32 1.442695, %v781_v30  ;;  %v857_v50 = vmul.f32 1.442695, %v782_v48  ;;  %967 = vadd.xlane.f32.xlu1 %v966_v62 }
 0x2ee   : > { %v1883_v51 = vpop.eup %1359  ;;  %v695_v55 = vpop.xlane.xlu1 %694 }
 0x2ef   : > { %1369 = vpow2.f32 %v855_v9  ;;  %v783_v18 = vsub.f32 %v1697_v4, %v695_v55  ;;  %v784_v53 = vsub.f32 %v1699_v5, %v695_v55  ;;  %v969_v1 = vadd.f32 %v1883_v51, %v1881_v63 }
 0x2f0   : > { %1371 = vpow2.f32 %v857_v50 }
 0x2f1   : > { %v1889_v2 = vpop.eup %1361  ;;  %v859_v33 = vmul.f32 1.442695, %v783_v18  ;;  %v861_v36 = vmul.f32 1.442695, %v784_v53  ;;  %970 = vadd.xlane.f32.xlu1 %v969_v1 }
 0x2f2   : > { %v1891_v24 = vpop.eup %1363  ;;  %v698_v56 = vpop.xlane.xlu1 %697 }
 0x2f3   : > { %1373 = vpow2.f32 %v859_v33  ;;  %v785_v57 = vsub.f32 %v1703_v7, %v698_v56  ;;  %v786_v21 = vsub.f32 %v1705_v8, %v698_v56  ;;  %v972_v4 = vadd.f32 %v1891_v24, %v1889_v2 }
 0x2f4   : > { %1375 = vpow2.f32 %v861_v36 }
 0x2f5   : > { %v1897_v5 = vpop.eup %1365  ;;  %v863_v60 = vmul.f32 1.442695, %v785_v57  ;;  %v865_v27 = vmul.f32 1.442695, %v786_v21  ;;  %973 = vadd.xlane.f32.xlu1 %v972_v4 }
 0x2f6   : > { %v1899_v39 = vpop.eup %1367  ;;  %v701_v30 = vpop.xlane.xlu1 %700 }
 0x2f7   : > { %1377 = vpow2.f32 %v863_v60  ;;  %v787_v48 = vsub.f32 %v1709_v10, %v701_v30  ;;  %v788_v62 = vsub.f32 %v1711_v11, %v701_v30  ;;  %v975_v7 = vadd.f32 %v1899_v39, %v1897_v5 }
 0x2f8   : > { %1379 = vpow2.f32 %v865_v27 }
 0x2f9   : > { %v1905_v8 = vpop.eup %1369  ;;  %v867_v9 = vmul.f32 1.442695, %v787_v48  ;;  %v869_v50 = vmul.f32 1.442695, %v788_v62  ;;  %976 = vadd.xlane.f32.xlu1 %v975_v7 }
 0x2fa   : > { %v1907_v55 = vpop.eup %1371  ;;  %v704_v18 = vpop.xlane.xlu1 %703 }
 0x2fb   : > { %1381 = vpow2.f32 %v867_v9  ;;  %v789_v53 = vsub.f32 %v1715_v13, %v704_v18  ;;  %v790_v1 = vsub.f32 %v1717_v14, %v704_v18  ;;  %v978_v10 = vadd.f32 %v1907_v55, %v1905_v8 }
 0x2fc   : > { %1383 = vpow2.f32 %v869_v50 }
 0x2fd   : > { %v1913_v11 = vpop.eup %1373  ;;  %v871_v33 = vmul.f32 1.442695, %v789_v53  ;;  %v873_v36 = vmul.f32 1.442695, %v790_v1  ;;  %979 = vadd.xlane.f32.xlu1 %v978_v10 }
 0x2fe   : > { %v1915_v56 = vpop.eup %1375  ;;  %v707_v57 = vpop.xlane.xlu1 %706 }
 0x2ff   : > { %1385 = vpow2.f32 %v871_v33  ;;  %v791_v21 = vsub.f32 %v1721_v16, %v707_v57  ;;  %v792_v4 = vsub.f32 %v1723_v17, %v707_v57  ;;  %v981_v13 = vadd.f32 %v1915_v56, %v1913_v11 }
 0x300   : > { %1387 = vpow2.f32 %v873_v36 }
 0x301   : > { %v1921_v14 = vpop.eup %1377  ;;  %v875_v60 = vmul.f32 1.442695, %v791_v21  ;;  %v877_v27 = vmul.f32 1.442695, %v792_v4  ;;  %982 = vadd.xlane.f32.xlu1 %v981_v13 }
 0x302   : > { %v1923_v30 = vpop.eup %1379  ;;  %v710_v48 = vpop.xlane.xlu1 %709 }
 0x303   : > { %1389 = vpow2.f32 %v875_v60  ;;  %v793_v62 = vsub.f32 %v1727_v19, %v710_v48  ;;  %v794_v7 = vsub.f32 %v1729_v20, %v710_v48  ;;  %v984_v16 = vadd.f32 %v1923_v30, %v1921_v14 }
 0x304   : > { %1391 = vpow2.f32 %v877_v27 }
 0x305   : > { %v1929_v17 = vpop.eup %1381  ;;  %v879_v9 = vmul.f32 1.442695, %v793_v62  ;;  %v881_v50 = vmul.f32 1.442695, %v794_v7  ;;  %985 = vadd.xlane.f32.xlu1 %v984_v16 }
 0x306   : > { %v1931_v18 = vpop.eup %1383  ;;  %v713_v53 = vpop.xlane.xlu1 %712 }
 0x307   : > { %1393 = vpow2.f32 %v879_v9  ;;  %v795_v1 = vsub.f32 %v1733_v22, %v713_v53  ;;  %v796_v10 = vsub.f32 %v1735_v23, %v713_v53  ;;  %v987_v19 = vadd.f32 %v1931_v18, %v1929_v17 }
 0x308   : > { %1395 = vpow2.f32 %v881_v50 }
 0x309   : > { %v1937_v20 = vpop.eup %1385  ;;  %v883_v33 = vmul.f32 1.442695, %v795_v1  ;;  %v885_v36 = vmul.f32 1.442695, %v796_v10  ;;  %988 = vadd.xlane.f32.xlu1 %v987_v19 }
 0x30a   : > { %v1939_v57 = vpop.eup %1387  ;;  %v716_v21 = vpop.xlane.xlu1 %715 }
 0x30b   : > { %1397 = vpow2.f32 %v883_v33  ;;  %v797_v4 = vsub.f32 %v1739_v25, %v716_v21  ;;  %v798_v13 = vsub.f32 %v1741_v26, %v716_v21  ;;  %v990_v22 = vadd.f32 %v1939_v57, %v1937_v20 }
 0x30c   : > { %1399 = vpow2.f32 %v885_v36 }
 0x30d   : > { %v1945_v23 = vpop.eup %1389  ;;  %v887_v60 = vmul.f32 1.442695, %v797_v4  ;;  %v889_v27 = vmul.f32 1.442695, %v798_v13  ;;  %991 = vadd.xlane.f32.xlu1 %v990_v22 }
 0x30e   : > { %v1947_v48 = vpop.eup %1391  ;;  %v719_v62 = vpop.xlane.xlu1 %718 }
 0x30f   : > { %1401 = vpow2.f32 %v887_v60  ;;  %v799_v7 = vsub.f32 %v1745_v28, %v719_v62  ;;  %v800_v16 = vsub.f32 %v1747_v29, %v719_v62  ;;  %v993_v25 = vadd.f32 %v1947_v48, %v1945_v23 }
 0x310   : > { %1403 = vpow2.f32 %v889_v27 }
 0x311   : > { %v1953_v26 = vpop.eup %1393  ;;  %v891_v9 = vmul.f32 1.442695, %v799_v7  ;;  %v893_v50 = vmul.f32 1.442695, %v800_v16  ;;  %994 = vadd.xlane.f32.xlu1 %v993_v25 }
 0x312   : > { %v1955_v53 = vpop.eup %1395  ;;  %v722_v1 = vpop.xlane.xlu1 %721 }
 0x313   : > { %1405 = vpow2.f32 %v891_v9  ;;  %v801_v10 = vsub.f32 %v1751_v31, %v722_v1  ;;  %v802_v19 = vsub.f32 %v1753_v32, %v722_v1  ;;  %v996_v28 = vadd.f32 %v1955_v53, %v1953_v26 }
 0x314   : > { %1407 = vpow2.f32 %v893_v50 }
 0x315   : > { %v1961_v29 = vpop.eup %1397  ;;  %v895_v33 = vmul.f32 1.442695, %v801_v10  ;;  %v897_v36 = vmul.f32 1.442695, %v802_v19  ;;  %997 = vadd.xlane.f32.xlu1 %v996_v28 }
 0x316   : > { %v1963_v21 = vpop.eup %1399  ;;  %v725_v4 = vpop.xlane.xlu1 %724 }
 0x317   : > { %1409 = vpow2.f32 %v895_v33  ;;  %v803_v13 = vsub.f32 %v1757_v34, %v725_v4  ;;  %v804_v22 = vsub.f32 %v1759_v35, %v725_v4  ;;  %v999_v31 = vadd.f32 %v1963_v21, %v1961_v29 }
 0x318   : > { %1411 = vpow2.f32 %v897_v36 }
 0x319   : > { %v1969_v32 = vpop.eup %1401  ;;  %v899_v60 = vmul.f32 1.442695, %v803_v13  ;;  %v901_v27 = vmul.f32 1.442695, %v804_v22  ;;  %1000 = vadd.xlane.f32.xlu0 %v999_v31 }
 0x31a   : > { %v1971_v62 = vpop.eup %1403  ;;  %v728_v7 = vpop.xlane.xlu0 %727 }
 0x31b   : > { %1413 = vpow2.f32 %v899_v60  ;;  %v805_v16 = vsub.f32 %v1763_v37, %v728_v7  ;;  %v806_v25 = vsub.f32 %v1765_v38, %v728_v7  ;;  %v1002_v34 = vadd.f32 %v1971_v62, %v1969_v32 }
 0x31c   : > { %1415 = vpow2.f32 %v901_v27 }
 0x31d   : > { %v1977_v35 = vpop.eup %1405  ;;  %v903_v9 = vmul.f32 1.442695, %v805_v16  ;;  %v905_v50 = vmul.f32 1.442695, %v806_v25  ;;  %1003 = vadd.xlane.f32.xlu1 %v1002_v34 }
 0x31e   : > { %v1979_v1 = vpop.eup %1407  ;;  %v731_v10 = vpop.xlane.xlu1 %730 }
 0x31f   : > { %1417 = vpow2.f32 %v903_v9  ;;  %v807_v19 = vsub.f32 %v1769_v40, %v731_v10  ;;  %v808_v28 = vsub.f32 %v1771_v41, %v731_v10  ;;  %v1005_v37 = vadd.f32 %v1979_v1, %v1977_v35 }
 0x320   : > { %1419 = vpow2.f32 %v905_v50 }
 0x321   : > { %v1985_v38 = vpop.eup %1409  ;;  %v907_v33 = vmul.f32 1.442695, %v807_v19  ;;  %v909_v36 = vmul.f32 1.442695, %v808_v28  ;;  %1006 = vadd.xlane.f32.xlu0 %v1005_v37 }
 0x322   : > { %v1987_v4 = vpop.eup %1411  ;;  %v734_v13 = vpop.xlane.xlu1 %733 }
 0x323   : > { %1421 = vpow2.f32 %v907_v33  ;;  %v809_v22 = vsub.f32 %v1775_v43, %v734_v13  ;;  %v810_v31 = vsub.f32 %v1777_v44, %v734_v13  ;;  %v1008_v40 = vadd.f32 %v1987_v4, %v1985_v38 }
 0x324   : > { %1423 = vpow2.f32 %v909_v36 }
 0x325   : > { %v1993_v41 = vpop.eup %1413  ;;  %v911_v60 = vmul.f32 1.442695, %v809_v22  ;;  %v913_v27 = vmul.f32 1.442695, %v810_v31  ;;  %1009 = vadd.xlane.f32.xlu1 %v1008_v40 }
 0x326   : > { %v1995_v7 = vpop.eup %1415  ;;  %v737_v16 = vpop.xlane.xlu1 %736 }
 0x327   : > { %1425 = vpow2.f32 %v911_v60  ;;  %v811_v25 = vsub.f32 %v1781_v46, %v737_v16  ;;  %v812_v34 = vsub.f32 %v1783_v47, %v737_v16  ;;  %v1011_v43 = vadd.f32 %v1995_v7, %v1993_v41 }
 0x328   : > { %1427 = vpow2.f32 %v913_v27 }
 0x329   : > { %v2001_v44 = vpop.eup %1417  ;;  %v915_v9 = vmul.f32 1.442695, %v811_v25  ;;  %v917_v50 = vmul.f32 1.442695, %v812_v34  ;;  %1012 = vadd.xlane.f32.xlu0 %v1011_v43 }
 0x32a   : > { %v2003_v10 = vpop.eup %1419  ;;  %v740_v19 = vpop.xlane.xlu1 %739 }
 0x32b   : > { %1429 = vpow2.f32 %v915_v9  ;;  %v813_v28 = vsub.f32 %v1787_v49, %v740_v19  ;;  %v814_v37 = vsub.f32 %v1789_v52, %v740_v19  ;;  %v1014_v46 = vadd.f32 %v2003_v10, %v2001_v44 }
 0x32c   : > { %1431 = vpow2.f32 %v917_v50 }
 0x32d   : > { %v2009_v47 = vpop.eup %1421  ;;  %v919_v33 = vmul.f32 1.442695, %v813_v28  ;;  %v921_v36 = vmul.f32 1.442695, %v814_v37  ;;  %1015 = vadd.xlane.f32.xlu1 %v1014_v46 }
 0x32e   : > { %v2011_v13 = vpop.eup %1423  ;;  %v743_v22 = vpop.xlane.xlu1 %742 }
 0x32f   : > { %1433 = vpow2.f32 %v919_v33  ;;  %v815_v31 = vsub.f32 %v1793_v58, %v743_v22  ;;  %v816_v40 = vsub.f32 %v1795_v61, %v743_v22  ;;  %v1017_v49 = vadd.f32 %v2011_v13, %v2009_v47 }
 0x330   : > { %1435 = vpow2.f32 %v921_v36 }
 0x331   : > { %v2017_v52 = vpop.eup %1425  ;;  %v923_v60 = vmul.f32 1.442695, %v815_v31  ;;  %v925_v27 = vmul.f32 1.442695, %v816_v40  ;;  %1018 = vadd.xlane.f32.xlu0 %v1017_v49  ;;  %v2234_v40 = vld [vmem:[#allocation2_spill] sm:$0xff] }
 0x332   : > { %v2019_v16 = vpop.eup %1427  ;;  %v746_v25 = vpop.xlane.xlu1 %745 }
 0x333   : > { %1437 = vpow2.f32 %v923_v60  ;;  %v817_v34 = vsub.f32 %v1799_v3, %v746_v25  ;;  %v818_v43 = vsub.f32 %v1801_v6, %v746_v25  ;;  %v1020_v58 = vadd.f32 %v2019_v16, %v2017_v52  ;;  %v2235_v60 = vld [vmem:[#allocation3_spill] sm:$0xff] }
 0x334   : > { %1439 = vpow2.f32 %v925_v27 }
 0x335   : > { %v2025_v61 = vpop.eup %1429  ;;  %v927_v9 = vmul.f32 1.442695, %v817_v34  ;;  %v929_v50 = vmul.f32 1.442695, %v818_v43  ;;  %1021 = vadd.xlane.f32.xlu1 %v1020_v58 }
 0x336   : > { %v2027_v19 = vpop.eup %1431  ;;  %v749_v28 = vpop.xlane.xlu1 %748 }
 0x337   : > { %1441 = vpow2.f32 %v927_v9  ;;  %v819_v37 = vsub.f32 %v1805_v12, %v749_v28  ;;  %v820_v46 = vsub.f32 %v1807_v15, %v749_v28  ;;  %v1023_v3 = vadd.f32 %v2027_v19, %v2025_v61  ;;  %v2237_v9 = vld [vmem:[#allocation4_spill] sm:$0xff]  ;;  %v2238_v28 = vld [vmem:[#allocation5_spill] sm:$0xff] }
 0x338   : > { %1443 = vpow2.f32 %v929_v50 }
 0x339   : > { %v2033_v6 = vpop.eup %1433  ;;  %v931_v33 = vmul.f32 1.442695, %v819_v37  ;;  %v933_v36 = vmul.f32 1.442695, %v820_v46  ;;  %1024 = vadd.xlane.f32.xlu0 %v1023_v3 }
 0x33a   : > { %v2035_v22 = vpop.eup %1435  ;;  %v752_v31 = vpop.xlane.xlu1 %751 }
 0x33b   : > { %1445 = vpow2.f32 %v931_v33  ;;  %v821_v49 = vsub.f32 %v2234_v40, %v752_v31  ;;  %v822_v27 = vsub.f32 %v2235_v60, %v752_v31  ;;  %v1026_v12 = vadd.f32 %v2035_v22, %v2033_v6 }
 0x33c   : > { %1447 = vpow2.f32 %v933_v36 }
 0x33d   : > { %v2041_v15 = vpop.eup %1437  ;;  %v935_v25 = vmul.f32 1.442695, %v821_v49  ;;  %v937_v34 = vmul.f32 1.442695, %v822_v27  ;;  %1027 = vadd.xlane.f32.xlu1 %v1026_v12  ;;  %v2241_v49 = vld [vmem:[#allocation6_spill] sm:$0xff]  ;;  %v2242_v27 = vld [vmem:[#allocation7_spill] sm:$0xff] }
 0x33e   : > { %2236 = vst [vmem:[#allocation2_spill] sm:$0xff] %v2041_v15  ;;  %v2043_v43 = vpop.eup %1439  ;;  %v755_v58 = vpop.xlane.xlu1 %754 }
 0x33f   : > { %1449 = vpow2.f32 %v935_v25  ;;  %v823_v50 = vsub.f32 %v2237_v9, %v755_v58  ;;  %v824_v37 = vsub.f32 %v2238_v28, %v755_v58  ;;  %v1029_v46 = vadd.f32 %v2043_v43, %v2041_v15 }
 0x340   : > { %1451 = vpow2.f32 %v937_v34 }
 0x341   : > { %v2049_v3 = vpop.eup %1441  ;;  %v939_v33 = vmul.f32 1.442695, %v823_v50  ;;  %v941_v36 = vmul.f32 1.442695, %v824_v37  ;;  %1030 = vadd.xlane.f32.xlu0 %v1029_v46  ;;  %v2245_v37 = vld [vmem:[#allocation8_spill] sm:$0xff] }
 0x342   : > { %2239 = vst [vmem:[#allocation3_spill] sm:$0xff] %v2049_v3  ;;  %v2051_v31 = vpop.eup %1443  ;;  %v758_v40 = vpop.xlane.xlu1 %757 }
 0x343   : > { %2240 = vst [vmem:[#allocation4_spill] sm:$0xff] %v2051_v31  ;;  %1453 = vpow2.f32 %v939_v33  ;;  %v825_v60 = vsub.f32 %v2241_v49, %v758_v40  ;;  %v826_v12 = vsub.f32 %v2242_v27, %v758_v40  ;;  %v1032_v25 = vadd.f32 %v2051_v31, %v2049_v3  ;;  %v2246_v33 = vld [vmem:[#allocation9_spill] sm:$0xff] }
 0x344   : > { %1455 = vpow2.f32 %v941_v36 }
 0x345   : > { %v2057_v58 = vpop.eup %1445  ;;  %v943_v34 = vmul.f32 1.442695, %v825_v60  ;;  %v945_v9 = vmul.f32 1.442695, %v826_v12  ;;  %1033 = vadd.xlane.f32.xlu1 %v1032_v25  ;;  %v2248_v25 = vld [vmem:[#allocation10_spill] sm:$0xff] }
 0x346   : > { %2243 = vst [vmem:[#allocation5_spill] sm:$0xff] %v2057_v58  ;;  %v2059_v50 = vpop.eup %1447  ;;  %v761_v28 = vpop.xlane.xlu1 %760 }
 0x347   : > { %2244 = vst [vmem:[#allocation6_spill] sm:$0xff] %v2059_v50  ;;  %1457 = vpow2.f32 %v943_v34  ;;  %v827_v46 = vsub.f32 %v2245_v37, %v761_v28  ;;  %v828_v15 = vsub.f32 %v2246_v33, %v761_v28  ;;  %v1035_v40 = vadd.f32 %v2059_v50, %v2057_v58  ;;  %v2249_v34 = vld [vmem:[#allocation11_spill] sm:$0xff] }
 0x348   : > { %1459 = vpow2.f32 %v945_v9 }
 0x349   : > { %v2065_v49 = vpop.eup %1449  ;;  %v947_v36 = vmul.f32 1.442695, %v827_v46  ;;  %v949_v27 = vmul.f32 1.442695, %v828_v15  ;;  %1036 = vadd.xlane.f32.xlu0 %v1035_v40  ;;  %v2250_v40 = vld [vmem:[#allocation12_spill] sm:$0xff] }
 0x34a   : > { %2247 = vst [vmem:[#allocation7_spill] sm:$0xff] %v2065_v49  ;;  %v2067_v60 = vpop.eup %1451  ;;  %v764_v12 = vpop.xlane.xlu1 %763 }
 0x34b   : > { %1461 = vpow2.f32 %v947_v36  ;;  %v829_v3 = vsub.f32 %v2248_v25, %v764_v12  ;;  %v830_v31 = vsub.f32 %v2249_v34, %v764_v12  ;;  %v1038_v28 = vadd.f32 %v2067_v60, %v2065_v49  ;;  %v2251_v36 = vld [vmem:[#allocation13_spill] sm:$0xff] }
 0x34c   : > { %1463 = vpow2.f32 %v949_v27 }
 0x34d   : > { %v2073_v37 = vpop.eup %1453  ;;  %v951_v9 = vmul.f32 1.442695, %v829_v3  ;;  %v953_v33 = vmul.f32 1.442695, %v830_v31  ;;  %1039 = vadd.xlane.f32.xlu1 %v1038_v28 }
 0x34e   : > { %v2075_v46 = vpop.eup %1455  ;;  %v767_v15 = vpop.xlane.xlu1 %766 }
 0x34f   : > { %1465 = vpow2.f32 %v951_v9  ;;  %v831_v58 = vsub.f32 %v2250_v40, %v767_v15  ;;  %v832_v50 = vsub.f32 %v2251_v36, %v767_v15  ;;  %v1041_v12 = vadd.f32 %v2075_v46, %v2073_v37  ;;  %v2253_v9 = vld [vmem:[#allocation14_spill] sm:$0xff] }
 0x350   : > { %1467 = vpow2.f32 %v953_v33 }
 0x351   : > { %v2081_v25 = vpop.eup %1457  ;;  %v955_v27 = vmul.f32 1.442695, %v831_v58  ;;  %v957_v34 = vmul.f32 1.442695, %v832_v50  ;;  %1042 = vadd.xlane.f32.xlu0 %v1041_v12 }
 0x352   : > { %2252 = vst [vmem:[#allocation8_spill] sm:$0xff] %v2081_v25  ;;  %v2083_v3 = vpop.eup %1459  ;;  %v770_v31 = vpop.xlane.xlu1 %769 }
 0x353   : > { %1469 = vpow2.f32 %v955_v27  ;;  %v833_v28 = vsub.f32 %v1851_v42, %v770_v31  ;;  %v834_v49 = vsub.f32 %v2253_v9, %v770_v31  ;;  %v1044_v15 = vadd.f32 %v2083_v3, %v2081_v25 }
 0x354   : > { %1471 = vpow2.f32 %v957_v34 }
 0x355   : > { %v2089_v40 = vpop.eup %1461  ;;  %v959_v33 = vmul.f32 1.442695, %v833_v28  ;;  %v961_v36 = vmul.f32 1.442695, %v834_v49  ;;  %1045 = vadd.xlane.f32.xlu1 %v1044_v15 }
 0x356   : > { %2254 = vst [vmem:[#allocation9_spill] sm:$0xff] %v2089_v40  ;;  %v2091_v58 = vpop.eup %1463 }
 0x357   : > { %2255 = vst [vmem:[#allocation10_spill] sm:$0xff] %v2091_v58  ;;  %1473 = vpow2.f32 %v959_v33  ;;  %v1047_v50 = vadd.f32 %v2091_v58, %v2089_v40 }
 0x358   : > { %1475 = vpow2.f32 %v961_v36 }
 0x359   : > { %v2095_v12 = vpop.eup %1465  ;;  %1048 = vadd.xlane.f32.xlu0 %v1047_v50 }
 0x35a   : > { %2256 = vst [vmem:[#allocation11_spill] sm:$0xff] %v2095_v12  ;;  %v2097_v42 = vpop.eup %1467 }
 0x35b   : > { %2257 = vst [vmem:[#allocation12_spill] sm:$0xff] %v2097_v42  ;;  %v1050_v27 = vadd.f32 %v2097_v42, %v2095_v12 }
 0x35d   : > { %v2101_v34 = vpop.eup %1469  ;;  %1051 = vadd.xlane.f32.xlu1 %v1050_v27  ;;  %v2113_v27 = vpop.f32.mrb[4].mxu0 }
 0x35e   : > { %2258 = vst [vmem:[#allocation13_spill] sm:$0xff] %v2101_v34  ;;  %v2103_v49 = vpop.eup %1471  ;;  %2262 = vst [vmem:[#allocation17_spill] sm:$0xff] %v2113_v27  ;;  %v251_v12 = vpop.f32.mrb[5].mxu0 }
 0x35f   : > { %2259 = vst [vmem:[#allocation14_spill] sm:$0xff] %v2103_v49  ;;  %v1053_v31 = vadd.f32 %v2103_v49, %v2101_v34  ;;  %v1156_v40 = vpack.c.bf16 %v251_v12, %v251_v12  ;;  %v253_v42 = vpop.f32.mrb[6].mxu0 }
 0x360   : > { %v254_v34 = vpop.f32.mrb[7].mxu0 }
 0x361   : > { %v2107_v28 = vpop.eup %1473  ;;  %1054 = vadd.xlane.f32.xlu0 %v1053_v31  ;;  %1221 = vmatprep.mubr.bf16.mxu0 %v1156_v40 }
 0x362   : > { %2260 = vst [vmem:[#allocation15_spill] sm:$0xff] %v2107_v28  ;;  %v2109_v9 = vpop.eup %1475 }
 0x363   : > { %2261 = vst [vmem:[#allocation16_spill] sm:$0xff] %v2109_v9  ;;  %v1056_v15 = vadd.f32 %v2109_v9, %v2107_v28 }
 0x365   : > { %1057 = vadd.xlane.f32.xlu1 %v1056_v15 }
 0x376   : > { %v965_v33 = vpop.xlane.xlu1 %964 }
 0x377   : > { %1477 = vrcp.f32 %v965_v33 }
 0x37a   : > { %v968_v36 = vpop.xlane.xlu1 %967 }
 0x37b   : > { %1479 = vrcp.f32 %v968_v36 }
 0x37e   : > { %v971_v50 = vpop.xlane.xlu1 %970 }
 0x37f   : > { %1481 = vrcp.f32 %v971_v50 }
 0x381   : > { %v1478_v31 = vpop.eup %1477 }
 0x382   : > { %v974_v49 = vpop.xlane.xlu1 %973  ;;  %v1092_v15 = vmul.f32 %v1478_v31, %v1867_v45  ;;  %v1091_v36 = vmul.f32 %v1478_v31, %v1865_v54 }
 0x383   : > { %1483 = vrcp.f32 %v974_v49 }
 0x385   : > { %v1480_v58 = vpop.eup %1479 }
 0x386   : > { %v977_v25 = vpop.xlane.xlu1 %976  ;;  %v1094_v33 = vmul.f32 %v1480_v58, %v1875_v0  ;;  %v1093_v28 = vmul.f32 %v1480_v58, %v1873_v59 }
 0x387   : > { %1485 = vrcp.f32 %v977_v25 }
 0x388   : > { %v1158_v27 = vpack.c.bf16 %v1094_v33, %v1092_v15  ;;  %v1157_v9 = vpack.c.bf16 %v1093_v28, %v1091_v36 }
 0x389   : > { %v1482_v42 = vpop.eup %1481 }
 0x38a   : > { %1189 = vmatprep.subr.bf16.mxu0 %v1158_v27  ;;  %v980_v12 = vpop.xlane.xlu1 %979  ;;  %v1096_v49 = vmul.f32 %v1482_v42, %v1883_v51  ;;  %v1095_v0 = vmul.f32 %v1482_v42, %v1881_v63 }
 0x38b   : > { %1487 = vrcp.f32 %v980_v12  ;;  %1190 = vmatpush1.bf16.msra.mxu0 %v1157_v9 }
 0x38d   : > { %v1484_v40 = vpop.eup %1483 }
 0x38e   : > { %v983_v34 = vpop.xlane.xlu1 %982  ;;  %v1098_v45 = vmul.f32 %v1484_v40, %v1891_v24  ;;  %v1097_v54 = vmul.f32 %v1484_v40, %v1889_v2 }
 0x38f   : > { %1489 = vrcp.f32 %v983_v34 }
 0x390   : > { %v1160_v50 = vpack.c.bf16 %v1098_v45, %v1096_v49  ;;  %v1159_v59 = vpack.c.bf16 %v1097_v54, %v1095_v0 }
 0x391   : > { %v1486_v58 = vpop.eup %1485 }
 0x392   : > { %1191 = vmatprep.subr.bf16.mxu0 %v1160_v50  ;;  %v986_v25 = vpop.xlane.xlu1 %985  ;;  %v1100_v27 = vmul.f32 %v1486_v58, %v1899_v39  ;;  %v1099_v24 = vmul.f32 %v1486_v58, %v1897_v5 }
 0x393   : > { %1491 = vrcp.f32 %v986_v25  ;;  %1192 = vmatpush1.bf16.msra.mxu0 %v1159_v59 }
 0x395   : > { %v1488_v28 = vpop.eup %1487 }
 0x396   : > { %v989_v9 = vpop.xlane.xlu1 %988  ;;  %v1102_v51 = vmul.f32 %v1488_v28, %v1907_v55  ;;  %v1101_v63 = vmul.f32 %v1488_v28, %v1905_v8 }
 0x397   : > { %1493 = vrcp.f32 %v989_v9 }
 0x398   : > { %v1162_v31 = vpack.c.bf16 %v1102_v51, %v1100_v27  ;;  %v1161_v2 = vpack.c.bf16 %v1101_v63, %v1099_v24 }
 0x399   : > { %v1490_v33 = vpop.eup %1489 }
 0x39a   : > { %1193 = vmatprep.subr.bf16.mxu0 %v1162_v31  ;;  %v992_v15 = vpop.xlane.xlu1 %991  ;;  %v1104_v42 = vmul.f32 %v1490_v33, %v1915_v56  ;;  %v1103_v55 = vmul.f32 %v1490_v33, %v1913_v11 }
 0x39b   : > { %1495 = vrcp.f32 %v992_v15  ;;  %1194 = vmatpush1.bf16.msra.mxu0 %v1161_v2 }
 0x39d   : > { %v1492_v36 = vpop.eup %1491 }
 0x39e   : > { %v995_v12 = vpop.xlane.xlu1 %994  ;;  %v1106_v39 = vmul.f32 %v1492_v36, %v1923_v30  ;;  %v1105_v5 = vmul.f32 %v1492_v36, %v1921_v14 }
 0x39f   : > { %1497 = vrcp.f32 %v995_v12 }
 0x3a0   : > { %v1164_v40 = vpack.c.bf16 %v1106_v39, %v1104_v42  ;;  %v1163_v8 = vpack.c.bf16 %v1105_v5, %v1103_v55 }
 0x3a1   : > { %v1494_v49 = vpop.eup %1493 }
 0x3a2   : > { %1195 = vmatprep.subr.bf16.mxu0 %v1164_v40  ;;  %v998_v34 = vpop.xlane.xlu1 %997  ;;  %v1108_v54 = vmul.f32 %v1494_v49, %v1931_v18  ;;  %v1107_v30 = vmul.f32 %v1494_v49, %v1929_v17 }
 0x3a3   : > { %1499 = vrcp.f32 %v998_v34  ;;  %1196 = vmatpush1.bf16.msra.mxu0 %v1163_v8 }
 0x3a5   : > { %v1496_v45 = vpop.eup %1495 }
 0x3a6   : > { %v1001_v0 = vpop.xlane.xlu0 %1000  ;;  %v1110_v56 = vmul.f32 %v1496_v45, %v1939_v57  ;;  %v1109_v11 = vmul.f32 %v1496_v45, %v1937_v20 }
 0x3a7   : > { %1501 = vrcp.f32 %v1001_v0 }
 0x3a8   : > { %v1166_v50 = vpack.c.bf16 %v1110_v56, %v1108_v54  ;;  %v1165_v14 = vpack.c.bf16 %v1109_v11, %v1107_v30 }
 0x3a9   : > { %v1498_v25 = vpop.eup %1497 }
 0x3aa   : > { %1197 = vmatprep.subr.bf16.mxu0 %v1166_v50  ;;  %v1004_v59 = vpop.xlane.xlu1 %1003  ;;  %v1112_v9 = vmul.f32 %v1498_v25, %v1947_v48  ;;  %v1111_v57 = vmul.f32 %v1498_v25, %v1945_v23 }
 0x3ab   : > { %1503 = vrcp.f32 %v1004_v59  ;;  %1198 = vmatpush1.bf16.msra.mxu0 %v1165_v14 }
 0x3ad   : > { %v1500_v58 = vpop.eup %1499 }
 0x3ae   : > { %v1007_v28 = vpop.xlane.xlu0 %1006  ;;  %v1114_v18 = vmul.f32 %v1500_v58, %v1955_v53  ;;  %v1113_v17 = vmul.f32 %v1500_v58, %v1953_v26 }
 0x3af   : > { %1505 = vrcp.f32 %v1007_v28 }
 0x3b0   : > { %v1168_v27 = vpack.c.bf16 %v1114_v18, %v1112_v9  ;;  %v1167_v20 = vpack.c.bf16 %v1113_v17, %v1111_v57 }
 0x3b1   : > { %v1502_v24 = vpop.eup %1501 }
 0x3b2   : > { %1199 = vmatprep.subr.bf16.mxu0 %v1168_v27  ;;  %v1010_v51 = vpop.xlane.xlu1 %1009  ;;  %v1116_v2 = vmul.f32 %v1502_v24, %v1963_v21  ;;  %v1115_v53 = vmul.f32 %v1502_v24, %v1961_v29  ;;  %v2264_v24 = vld [vmem:[#allocation2_spill] sm:$0xff] }
 0x3b3   : > { %1507 = vrcp.f32 %v1010_v51  ;;  %1200 = vmatpush1.bf16.msra.mxu0 %v1167_v20  ;;  %v2263_v51 = vld [vmem:[#allocation4_spill] sm:$0xff] }
 0x3b5   : > { %v1504_v63 = vpop.eup %1503 }
 0x3b6   : > { %v1013_v31 = vpop.xlane.xlu0 %1012  ;;  %v1118_v48 = vmul.f32 %v1504_v63, %v1971_v62  ;;  %v1117_v23 = vmul.f32 %v1504_v63, %v1969_v32  ;;  %v2265_v63 = vld [vmem:[#allocation3_spill] sm:$0xff] }
 0x3b7   : > { %1509 = vrcp.f32 %v1013_v31 }
 0x3b8   : > { %v1170_v15 = vpack.c.bf16 %v1118_v48, %v1116_v2  ;;  %v1169_v26 = vpack.c.bf16 %v1117_v23, %v1115_v53 }
 0x3b9   : > { %v1506_v36 = vpop.eup %1505 }
 0x3ba   : > { %v1016_v33 = vpop.xlane.xlu1 %1015  ;;  %1201 = vmatprep.subr.bf16.mxu0 %v1170_v15  ;;  %v1120_v39 = vmul.f32 %v1506_v36, %v1979_v1  ;;  %v1119_v62 = vmul.f32 %v1506_v36, %v1977_v35  ;;  %v2266_v15 = vld [vmem:[#allocation6_spill] sm:$0xff] }
 0x3bb   : > { %1511 = vrcp.f32 %v1016_v33  ;;  %1202 = vmatpush1.bf16.msra.mxu0 %v1169_v26  ;;  %v2267_v33 = vld [vmem:[#allocation5_spill] sm:$0xff] }
 0x3bd   : > { %v1508_v12 = vpop.eup %1507 }
 0x3be   : > { %v1019_v42 = vpop.xlane.xlu0 %1018  ;;  %v1122_v21 = vmul.f32 %v1508_v12, %v1987_v4  ;;  %v1121_v29 = vmul.f32 %v1508_v12, %v1985_v38  ;;  %v2268_v12 = vld [vmem:[#allocation7_spill] sm:$0xff] }
 0x3bf   : > { %1513 = vrcp.f32 %v1019_v42 }
 0x3c0   : > { %v1172_v55 = vpack.c.bf16 %v1122_v21, %v1120_v39  ;;  %v1171_v32 = vpack.c.bf16 %v1121_v29, %v1119_v62 }
 0x3c1   : > { %v1510_v40 = vpop.eup %1509 }
 0x3c2   : > { %v1022_v5 = vpop.xlane.xlu1 %1021  ;;  %1203 = vmatprep.subr.bf16.mxu0 %v1172_v55  ;;  %v1124_v49 = vmul.f32 %v1510_v40, %v1995_v7  ;;  %v1123_v4 = vmul.f32 %v1510_v40, %v1993_v41 }
 0x3c3   : > { %1515 = vrcp.f32 %v1022_v5  ;;  %1204 = vmatpush1.bf16.msra.mxu0 %v1171_v32 }
 0x3c5   : > { %v1512_v8 = vpop.eup %1511 }
 0x3c6   : > { %v1025_v34 = vpop.xlane.xlu0 %1024  ;;  %v1126_v1 = vmul.f32 %v1512_v8, %v2003_v10  ;;  %v1125_v35 = vmul.f32 %v1512_v8, %v2001_v44  ;;  %v2269_v8 = vld [vmem:[#allocation8_spill] sm:$0xff] }
 0x3c7   : > { %1517 = vrcp.f32 %v1025_v34 }
 0x3c8   : > { %v1174_v45 = vpack.c.bf16 %v1126_v1, %v1124_v49  ;;  %v1173_v38 = vpack.c.bf16 %v1125_v35, %v1123_v4 }
 0x3c9   : > { %v1514_v54 = vpop.eup %1513 }
 0x3ca   : > { %v1028_v0 = vpop.xlane.xlu1 %1027  ;;  %1205 = vmatprep.subr.bf16.mxu0 %v1174_v45  ;;  %v1128_v11 = vmul.f32 %v1514_v54, %v2011_v13  ;;  %v1127_v10 = vmul.f32 %v1514_v54, %v2009_v47  ;;  %v2271_v54 = vld [vmem:[#allocation12_spill] sm:$0xff] }
 0x3cb   : > { %1519 = vrcp.f32 %v1028_v0  ;;  %1206 = vmatpush1.bf16.msra.mxu0 %v1173_v38  ;;  %v2270_v38 = vld [vmem:[#allocation10_spill] sm:$0xff] }
 0x3cd   : > { %v1516_v56 = vpop.eup %1515 }
 0x3ce   : > { %v1031_v30 = vpop.xlane.xlu0 %1030  ;;  %v1130_v7 = vmul.f32 %v1516_v56, %v2019_v16  ;;  %v1129_v41 = vmul.f32 %v1516_v56, %v2017_v52 }
 0x3cf   : > { %1521 = vrcp.f32 %v1031_v30 }
 0x3d0   : > { %v1176_v50 = vpack.c.bf16 %v1130_v7, %v1128_v11  ;;  %v1175_v44 = vpack.c.bf16 %v1129_v41, %v1127_v10 }
 0x3d1   : > { %v1518_v59 = vpop.eup %1517 }
 0x3d2   : > { %v1034_v14 = vpop.xlane.xlu1 %1033  ;;  %1207 = vmatprep.subr.bf16.mxu0 %v1176_v50  ;;  %v1132_v28 = vmul.f32 %v1518_v59, %v2027_v19  ;;  %v1131_v16 = vmul.f32 %v1518_v59, %v2025_v61  ;;  %v2274_v50 = vld [vmem:[#allocation14_spill] sm:$0xff] }
 0x3d3   : > { %1523 = vrcp.f32 %v1034_v14  ;;  %1208 = vmatpush1.bf16.msra.mxu0 %v1175_v44  ;;  %v2275_v14 = vld [vmem:[#allocation16_spill] sm:$0xff] }
 0x3d5   : > { %v1520_v25 = vpop.eup %1519 }
 0x3d6   : > { %v1037_v58 = vpop.xlane.xlu0 %1036  ;;  %v1134_v13 = vmul.f32 %v1520_v25, %v2035_v22  ;;  %v1133_v47 = vmul.f32 %v1520_v25, %v2033_v6  ;;  %v2276_v25 = vld [vmem:[#allocation13_spill] sm:$0xff] }
 0x3d7   : > { %1525 = vrcp.f32 %v1037_v58 }
 0x3d8   : > { %v1178_v9 = vpack.c.bf16 %v1134_v13, %v1132_v28  ;;  %v1177_v52 = vpack.c.bf16 %v1133_v47, %v1131_v16  ;;  %v2277_v28 = vld [vmem:[#allocation15_spill] sm:$0xff] }
 0x3d9   : > { %v1522_v57 = vpop.eup %1521 }
 0x3da   : > { %v1040_v18 = vpop.xlane.xlu1 %1039  ;;  %1209 = vmatprep.subr.bf16.mxu0 %v1178_v9  ;;  %v1136_v20 = vmul.f32 %v1522_v57, %v2043_v43  ;;  %v1135_v22 = vmul.f32 %v1522_v57, %v2264_v24  ;;  %v2278_v9 = vld [vmem:[#allocation17_spill] sm:$0xff] }
 0x3db   : > { %1527 = vrcp.f32 %v1040_v18  ;;  %1210 = vmatpush1.bf16.msra.mxu0 %v1177_v52  ;;  %v1155_v52 = vpack.c.bf16 %v2278_v9, %v2278_v9 }
 0x3dd   : > { %v1524_v17 = vpop.eup %1523 }
 0x3de   : > { %v1043_v27 = vpop.xlane.xlu0 %1042  ;;  %v1138_v19 = vmul.f32 %v1524_v17, %v2263_v51  ;;  %v1137_v61 = vmul.f32 %v1524_v17, %v2265_v63 }
 0x3df   : > { %1529 = vrcp.f32 %v1043_v27 }
 0x3e0   : > { %v1180_v31 = vpack.c.bf16 %v1138_v19, %v1136_v20  ;;  %v1179_v6 = vpack.c.bf16 %v1137_v61, %v1135_v22 }
 0x3e1   : > { %v1526_v48 = vpop.eup %1525 }
 0x3e2   : > { %v1046_v2 = vpop.xlane.xlu1 %1045  ;;  %1211 = vmatprep.subr.bf16.mxu0 %v1180_v31  ;;  %v1140_v26 = vmul.f32 %v1526_v48, %v2266_v15  ;;  %v1139_v36 = vmul.f32 %v1526_v48, %v2267_v33 }
 0x3e3   : > { %1531 = vrcp.f32 %v1046_v2  ;;  %1212 = vmatpush1.bf16.msra.mxu0 %v1179_v6 }
 0x3e5   : > { %v1528_v53 = vpop.eup %1527 }
 0x3e6   : > { %v1049_v23 = vpop.xlane.xlu0 %1048  ;;  %v1142_v43 = vmul.f32 %v1528_v53, %v2067_v60  ;;  %v1141_v42 = vmul.f32 %v1528_v53, %v2268_v12 }
 0x3e7   : > { %1533 = vrcp.f32 %v1049_v23 }
 0x3e8   : > { %v1182_v39 = vpack.c.bf16 %v1142_v43, %v1140_v26  ;;  %v1181_v21 = vpack.c.bf16 %v1141_v42, %v1139_v36 }
 0x3e9   : > { %v1530_v29 = vpop.eup %1529 }
 0x3ea   : > { %v1052_v62 = vpop.xlane.xlu1 %1051  ;;  %1213 = vmatprep.subr.bf16.mxu0 %v1182_v39  ;;  %v1144_v5 = vmul.f32 %v1530_v29, %v2075_v46  ;;  %v1143_v60 = vmul.f32 %v1530_v29, %v2073_v37  ;;  %v2272_v46 = vld [vmem:[#allocation9_spill] sm:$0xff] }
 0x3eb   : > { %1535 = vrcp.f32 %v1052_v62  ;;  %1214 = vmatpush1.bf16.msra.mxu0 %v1181_v21 }
 0x3ed   : > { %v1532_v55 = vpop.eup %1531 }
 0x3ee   : > { %v1055_v32 = vpop.xlane.xlu0 %1054  ;;  %v1146_v40 = vmul.f32 %v1532_v55, %v2083_v3  ;;  %v1145_v34 = vmul.f32 %v1532_v55, %v2269_v8  ;;  %v2273_v3 = vld [vmem:[#allocation11_spill] sm:$0xff] }
 0x3ef   : > { %1537 = vrcp.f32 %v1055_v32 }
 0x3f0   : > { %v1184_v49 = vpack.c.bf16 %v1146_v40, %v1144_v5  ;;  %v1183_v1 = vpack.c.bf16 %v1145_v34, %v1143_v60 }
 0x3f1   : > { %v1534_v35 = vpop.eup %1533 }
 0x3f2   : > { %v1058_v4 = vpop.xlane.xlu1 %1057  ;;  %1215 = vmatprep.subr.bf16.mxu0 %v1184_v49  ;;  %v1148_v0 = vmul.f32 %v1534_v35, %v2270_v38  ;;  %v1147_v30 = vmul.f32 %v1534_v35, %v2272_v46 }
 0x3f3   : > { %1539 = vrcp.f32 %v1058_v4  ;;  %1216 = vmatpush1.bf16.msra.mxu0 %v1183_v1 }
 0x3f5   : > { %v1536_v45 = vpop.eup %1535 }
 0x3f6   : > { %v1150_v56 = vmul.f32 %v1536_v45, %v2271_v54  ;;  %v1149_v11 = vmul.f32 %v1536_v45, %v2273_v3 }
 0x3f8   : > { %v1186_v37 = vpack.c.bf16 %v1150_v56, %v1148_v0  ;;  %v1185_v7 = vpack.c.bf16 %v1149_v11, %v1147_v30 }
 0x3f9   : > { %v1538_v10 = vpop.eup %1537 }
 0x3fa   : > { %1217 = vmatprep.subr.bf16.mxu0 %v1186_v37  ;;  %v1152_v44 = vmul.f32 %v1538_v10, %v2274_v50  ;;  %v1151_v58 = vmul.f32 %v1538_v10, %v2276_v25 }
 0x3fb   : > { %1218 = vmatpush1.bf16.msra.mxu0 %v1185_v7 }
 0x3fd   : > { %v1540_v41 = vpop.eup %1539 }
 0x3fe   : > { %v1154_v59 = vmul.f32 %v1540_v41, %v2275_v14  ;;  %v1153_v13 = vmul.f32 %v1540_v41, %v2277_v28 }
 0x400   : > { %v1188_v16 = vpack.c.bf16 %v1154_v59, %v1152_v44  ;;  %v1187_v47 = vpack.c.bf16 %v1153_v13, %v1151_v58 }
 0x402   : > { %1219 = vmatprep.subr.bf16.mxu0 %v1188_v16 }
 0x403   : > { %1220 = vmatpush1.bf16.msra.mxu0 %v1187_v47 }
 0x406   : > { %1222 = vmatmul.mubr.bf16.vlgmr.msra.gmra.mrb[8].mxu0 %v1155_v52 }
 0x4d9   : > { %v1223_v18 = vpop.f32.mrb[8].mxu0 }
 0x4da   : > { %1230 = vst [vmem:[%s170_s28] sm:$0xff] %v1223_v18  ;;  %v1225_v57 = vpop.f32.mrb[9].mxu0 }
 0x4db   : > { %1231 = vst [vmem:[%s170_s28 + $0x8] sm:$0xff] %v1225_v57  ;;  %v1227_v17 = vpop.f32.mrb[10].mxu0 }
 0x4dc   : > { %v1228_v27 = vpop.f32.mrb[11].mxu0 }
 0x4dd PF: > { %s13_s12 = sadd.s32 1, %s1547_s12  }
 0x4de   : > { %p10_p4 = scmp.ge.s32.totalorder %s13_s12, 4  }
 0x4e0   :  { %12 = sbr.rel (!%p10_p4) target bundleno = 1 (0x1), region = 62 }

</bundles_post_ra>
